<compile_context>
chip_gen: v6e
topology: v6e:2x2x1
jax: 0.10.0
libtpu: 0.0.40
codegen_flags: <defaults>
</compile_context>

<pallas_src>
import functools
import math

import jax
import jax.numpy as jnp
from jax.experimental import pallas as pl
from jax.experimental.pallas import tpu as pltpu


VMEM_LIMIT = 64 * 1024 * 1024  # explicit scoped-VMEM budget for the bigger kernels


# ----------------------------------------------------------------------------
# Small helpers (weights are already bf16; only activations get cast per use)
# ----------------------------------------------------------------------------
def _mmb(a, w_bf16):
    """a @ w with bf16 MXU operands and f32 accumulation (w pre-cast)."""
    return jnp.dot(a.astype(jnp.bfloat16), w_bf16.astype(jnp.bfloat16),
                   preferred_element_type=jnp.float32)


def _mmbt(a, b):
    """a @ b.T with bf16 MXU operands, f32 accumulation."""
    return jax.lax.dot_general(a.astype(jnp.bfloat16), b.astype(jnp.bfloat16),
                               (((1,), (1,)), ((), ())),
                               preferred_element_type=jnp.float32)


# ----------------------------------------------------------------------------
# Generic row-wise linear (M-tiled)
# ----------------------------------------------------------------------------
def _linear_kernel(x_ref, w_ref, b_ref, o_ref, *, relu):
    acc = _mmb(x_ref[...], w_ref[...]) + b_ref[...]
    if relu:
        acc = jnp.maximum(acc, 0.0)
    o_ref[...] = acc.astype(o_ref.dtype)


def pallas_linear(x, w_bf16, b, relu=False, tile_m=1024, out_dtype=None):
    """y = x @ w + b (optional ReLU).  x:(M,K), w:(K,N) bf16, b:(N,) f32."""
    M, K = x.shape
    N = w_bf16.shape[1]
    tm = M if M <= tile_m else tile_m
    out_dtype = out_dtype or x.dtype
    return pl.pallas_call(
        functools.partial(_linear_kernel, relu=relu),
        out_shape=jax.ShapeDtypeStruct((M, N), out_dtype),
        grid=(pl.cdiv(M, tm),),
        in_specs=[pl.BlockSpec((tm, K), lambda i: (i, 0)),
                  pl.BlockSpec((K, N), lambda i: (0, 0)),
                  pl.BlockSpec((1, N), lambda i: (0, 0))],
        out_specs=pl.BlockSpec((tm, N), lambda i: (i, 0)),
        compiler_params=pltpu.CompilerParams(dimension_semantics=("parallel",)),
    )(x, w_bf16, b.reshape(1, N))


# ----------------------------------------------------------------------------
# Backbone 1x1 (VPU, K=3) + input_proj + cross-attn K|V projection, one pass
# ----------------------------------------------------------------------------
def _backbone_feat_kv_kernel(x_ref, wb_ref, bb_ref, wp_ref, bp_ref, wkv_ref,
                             feat_ref, kv_ref):
    x = x_ref[...]                                           # (tm, 3) f32
    # K=3 "1x1 conv" as 3 VPU broadcast FMAs (MXU would waste >97% of its depth)
    f = (x[:, 0:1] * wb_ref[0:1, :] + x[:, 1:2] * wb_ref[1:2, :]
         + x[:, 2:3] * wb_ref[2:3, :] + bb_ref[...])
    f = jnp.maximum(f, 0.0)                                  # ReLU backbone features
    feat_ref[...] = f.astype(feat_ref.dtype)
    s = _mmb(f, wp_ref[...]) + bp_ref[...]                   # input_proj (MXU)
    # src never round-trips HBM: only its K|V projection is needed downstream
    kv_ref[...] = _mmb(s, wkv_ref[...]).astype(kv_ref.dtype)


def pallas_backbone_feat_kv(x_rows, params, tile_m=1024):
    M, Kin = x_rows.shape
    C = params['backbone_w'].shape[1]
    D = params['input_proj_w'].shape[1]
    D2 = params['gt_wcross_kv'].shape[1]
    tm = M if M <= tile_m else tile_m
    return pl.pallas_call(
        _backbone_feat_kv_kernel,
        out_shape=(jax.ShapeDtypeStruct((M, C), jnp.float32),
                   jax.ShapeDtypeStruct((M, D2), jnp.bfloat16)),
        grid=(pl.cdiv(M, tm),),
        in_specs=[pl.BlockSpec((tm, Kin), lambda i: (i, 0)),
                  pl.BlockSpec((Kin, C), lambda i: (0, 0)),
                  pl.BlockSpec((1, C), lambda i: (0, 0)),
                  pl.BlockSpec((C, D), lambda i: (0, 0)),
                  pl.BlockSpec((1, D), lambda i: (0, 0)),
                  pl.BlockSpec((D, D2), lambda i: (0, 0))],
        out_specs=(pl.BlockSpec((tm, C), lambda i: (i, 0)),
                   pl.BlockSpec((tm, D2), lambda i: (i, 0))),
        compiler_params=pltpu.CompilerParams(dimension_semantics=("parallel",)),
    )(x_rows, params['backbone_w'], params['backbone_b'].reshape(1, -1),
      params['input_proj_w'], params['input_proj_b'].reshape(1, -1),
      params['gt_wcross_kv'])


# ----------------------------------------------------------------------------
# Actor embedding: fc_emb(+ReLU) + 3-layer box-pos MLP + residual add
# ----------------------------------------------------------------------------
def _actor_embed_kernel(crop_ref, box_ref, wf_ref, bf_ref,
                        w1_ref, b1_ref, w2_ref, b2_ref, w3_ref, b3_ref, o_ref):
    # TODO(synk): drop_emb dropout is identity at inference.
    af = jnp.maximum(_mmb(crop_ref[...], wf_ref[...]) + bf_ref[...], 0.0)
    b = box_ref[...]                                         # (tm, 4) f32
    # K=4 first MLP layer as 4 VPU broadcast FMAs (keep off the MXU)
    h = (b[:, 0:1] * w1_ref[0:1, :] + b[:, 1:2] * w1_ref[1:2, :]
         + b[:, 2:3] * w1_ref[2:3, :] + b[:, 3:4] * w1_ref[3:4, :] + b1_ref[...])
    h = jnp.maximum(h, 0.0)
    h = jnp.maximum(_mmb(h, w2_ref[...]) + b2_ref[...], 0.0)
    pos = _mmb(h, w3_ref[...]) + b3_ref[...]
    o_ref[...] = (af + pos).astype(o_ref.dtype)


def pallas_actor_embed(crops_flat_bf16, boxes_flat, params, tile_m=256):
    # TODO(synk): for real crop/C sizes (Kc in the thousands) add a k grid axis
    # with an f32 VMEM accumulator so the (tm, Kc) block stays within v7x 64 MiB.
    M, Kc = crops_flat_bf16.shape
    D = params['fc_emb_w'].shape[1]
    tm = M if M <= tile_m else tile_m
    return pl.pallas_call(
        _actor_embed_kernel,
        out_shape=jax.ShapeDtypeStruct((M, D), jnp.float32),
        grid=(pl.cdiv(M, tm),),
        in_specs=[pl.BlockSpec((tm, Kc), lambda i: (i, 0)),
                  pl.BlockSpec((tm, 4), lambda i: (i, 0)),
                  pl.BlockSpec((Kc, D), lambda i: (0, 0)),
                  pl.BlockSpec((1, D), lambda i: (0, 0)),
                  pl.BlockSpec((4, D), lambda i: (0, 0)),
                  pl.BlockSpec((1, D), lambda i: (0, 0)),
                  pl.BlockSpec((D, D), lambda i: (0, 0)),
                  pl.BlockSpec((1, D), lambda i: (0, 0)),
                  pl.BlockSpec((D, D), lambda i: (0, 0)),
                  pl.BlockSpec((1, D), lambda i: (0, 0))],
        out_specs=pl.BlockSpec((tm, D), lambda i: (i, 0)),
        compiler_params=pltpu.CompilerParams(
            dimension_semantics=("parallel",),
            vmem_limit_bytes=VMEM_LIMIT),
    )(crops_flat_bf16, boxes_flat,
      params['fc_emb_w'], params['fc_emb_b'].reshape(1, -1),
      params['mlp_w1'], params['mlp_b1'].reshape(1, -1),
      params['mlp_w2'], params['mlp_b2'].reshape(1, -1),
      params['mlp_w3'], params['mlp_b3'].reshape(1, -1))


# ----------------------------------------------------------------------------
# Pairwise center distance: pure VPU, batch-parallel grid
# ----------------------------------------------------------------------------
def _pdist_kernel(c_ref, o_ref):
    c = c_ref[0].astype(jnp.float32)                         # (N, 2)
    ct = c.T                                                 # (2, N)
    dx = c[:, 0:1] - ct[0:1, :]                              # (N, N) broadcasts
    dy = c[:, 1:2] - ct[1:2, :]
    # d = sqrt((xi-xj)^2 + (yi-yj)^2): same distances as torch's rx-2xy+ry form,
    # but non-negative by construction (no NaN on the diagonal).
    o_ref[0] = jnp.sqrt(dx * dx + dy * dy).astype(o_ref.dtype)


def pallas_pairwise_distance(centers):
    BT, N, _ = centers.shape
    return pl.pallas_call(
        _pdist_kernel,
        out_shape=jax.ShapeDtypeStruct((BT, N, N), jnp.float32),
        grid=(BT,),
        in_specs=[pl.BlockSpec((1, N, 2), lambda b: (b, 0, 0))],
        out_specs=pl.BlockSpec((1, N, N), lambda b: (b, 0, 0)),
        compiler_params=pltpu.CompilerParams(dimension_semantics=("parallel",)),
    )(centers)


# ----------------------------------------------------------------------------
# Group transformer: masked self-attn + cross-attn (precomputed K|V) + FFN
# ----------------------------------------------------------------------------
def _group_transformer_kernel(tok_ref, bias_ref, kv_ref, posk_ref,
                              wsqkv_ref, wso_ref, wcq_ref, wco_ref,
                              w1_ref, b1_ref, w2_ref, b2_ref, o_ref):
    f32 = jnp.float32
    tok = tok_ref[0].astype(f32)                  # (L, D)
    bias = bias_ref[0]                            # (L, L) additive attention mask
    D = tok.shape[-1]

    def softmax(logits):
        logits = logits - jnp.max(logits, axis=-1, keepdims=True)
        p = jnp.exp(logits)
        return p * pl.reciprocal(jnp.sum(p, axis=-1, keepdims=True), approx=True)

    # ---- masked self-attention over [actor tokens ; group tokens] ----
    # (Q third of wsqkv is pre-scaled by 1/sqrt(D) at init.)
    qkv = _mmb(tok, wsqkv_ref[...])               # single stacked (L, 3D) MXU push
    q, k, v = qkv[:, :D], qkv[:, D:2 * D], qkv[:, 2 * D:]
    p = softmax(_mmbt(q, k) + bias)
    tok = tok + _mmb(_mmbt(p, v.T.T) if False else jnp.dot(
        p.astype(jnp.bfloat16), v.astype(jnp.bfloat16),
        preferred_element_type=f32), wso_ref[...])

    # ---- cross-attention vs. pre-projected feature-map K|V + sine pos on keys ----
    # TODO(synk): for real feature-map sizes stream the S axis flash-style; at
    # these sizes the whole (S, 2D) kv block fits comfortably in VMEM.
    q = _mmb(tok, wcq_ref[...])                   # (L, D), pre-scaled by 1/sqrt(D)
    kv = kv_ref[0]                                # (S, 2D) bf16 (src @ Wkv)
    k = kv[:, :D].astype(f32) + posk_ref[0]       # (mem+pos)@Wk == mem@Wk + pos@Wk
    v = kv[:, D:]
    p = softmax(_mmbt(q, k))
    tok = tok + _mmb(jnp.dot(p.astype(jnp.bfloat16), v.astype(jnp.bfloat16),
                             preferred_element_type=f32), wco_ref[...])

    # ---- FFN ----
    h = jnp.maximum(_mmb(tok, w1_ref[...]) + b1_ref[...], 0.0)
    tok = tok + _mmb(h, w2_ref[...]) + b2_ref[...]
    o_ref[0] = tok.astype(o_ref.dtype)


def pallas_group_transformer(tokens, attn_bias, kv_mem, pos_k, params):
    BT, L, D = tokens.shape
    S = kv_mem.shape[1]
    F = params['gt_w1'].shape[1]
    # TODO(synk): if profiling shows exposed DMA on the per-batch kv block (v6e),
    # bump its spec to pipeline_mode=pl.Buffered(3).
    return pl.pallas_call(
        _group_transformer_kernel,
        out_shape=jax.ShapeDtypeStruct((BT, L, D), jnp.float32),
        grid=(BT,),
        in_specs=[
            pl.BlockSpec((1, L, D), lambda b: (b, 0, 0)),
            pl.BlockSpec((1, L, L), lambda b: (b, 0, 0)),
            pl.BlockSpec((1, S, 2 * D), lambda b: (b, 0, 0)),
            pl.BlockSpec((1, S, D), lambda b: (0, 0, 0)),   # pos_k: VMEM-resident const
            pl.BlockSpec((D, 3 * D), lambda b: (0, 0)),
            pl.BlockSpec((D, D), lambda b: (0, 0)),
            pl.BlockSpec((D, D), lambda b: (0, 0)),
            pl.BlockSpec((D, D), lambda b: (0, 0)),
            pl.BlockSpec((D, F), lambda b: (0, 0)),
            pl.BlockSpec((1, F), lambda b: (0, 0)),
            pl.BlockSpec((F, D), lambda b: (0, 0)),
            pl.BlockSpec((1, D), lambda b: (0, 0)),
        ],
        out_specs=pl.BlockSpec((1, L, D), lambda b: (b, 0, 0)),
        compiler_params=pltpu.CompilerParams(
            dimension_semantics=("parallel",),
            vmem_limit_bytes=VMEM_LIMIT),
    )(tokens, attn_bias, kv_mem, pos_k,
      params['gt_wself_qkv'], params['gt_wself_o'],
      params['gt_wcross_q'], params['gt_wcross_o'],
      params['gt_w1'], params['gt_b1'].reshape(1, -1),
      params['gt_w2'], params['gt_b2'].reshape(1, -1))


# ----------------------------------------------------------------------------
# Membership: per-batch (K,N) bmm + softmax over groups (projections hoisted)
# ----------------------------------------------------------------------------
def _membership_kernel(a_ref, g_ref, m_ref):
    m = jax.lax.dot_general(g_ref[0], a_ref[0], (((1,), (1,)), ((), ())),
                            preferred_element_type=jnp.float32)      # (K, N)
    m = m - jnp.max(m, axis=0, keepdims=True)     # softmax over groups (torch dim=1)
    e = jnp.exp(m)
    m_ref[0] = (e / jnp.sum(e, axis=0, keepdims=True)).astype(m_ref.dtype)


def pallas_membership(actor_emb, group_emb):
    bs, N, D = actor_emb.shape
    K = group_emb.shape[1]
    return pl.pallas_call(
        _membership_kernel,
        out_shape=jax.ShapeDtypeStruct((bs, K, N), jnp.float32),
        grid=(bs,),
        in_specs=[pl.BlockSpec((1, N, D), lambda b: (b, 0, 0)),
                  pl.BlockSpec((1, K, D), lambda b: (b, 0, 0))],
        out_specs=pl.BlockSpec((1, K, N), lambda b: (b, 0, 0)),
        compiler_params=pltpu.CompilerParams(dimension_semantics=("parallel",)),
    )(actor_emb, group_emb)


# ----------------------------------------------------------------------------
# JAX glue
# ----------------------------------------------------------------------------
def sine_position_embedding(oh, ow, d):
    """DETR-style sine positional embedding, returned as (oh*ow, d)."""
    npf = d // 2
    eps = 1e-6
    scale = 2.0 * math.pi
    y_embed = (jnp.arange(oh, dtype=jnp.float32) + 1.0)
    x_embed = (jnp.arange(ow, dtype=jnp.float32) + 1.0)
    y_embed = y_embed / (y_embed[-1] + eps) * scale
    x_embed = x_embed / (x_embed[-1] + eps) * scale
    dim_t = 10000.0 ** (2 * (jnp.arange(npf) // 2) / npf)
    pos_x = x_embed[:, None] / dim_t
    pos_y = y_embed[:, None] / dim_t
    pos_x = jnp.stack([jnp.sin(pos_x[:, 0::2]), jnp.cos(pos_x[:, 1::2])],
                      axis=2).reshape(ow, -1)
    pos_y = jnp.stack([jnp.sin(pos_y[:, 0::2]), jnp.cos(pos_y[:, 1::2])],
                      axis=2).reshape(oh, -1)
    pos = jnp.concatenate([
        jnp.broadcast_to(pos_y[:, None, :], (oh, ow, npf)),
        jnp.broadcast_to(pos_x[None, :, :], (oh, ow, npf)),
    ], axis=-1)
    return pos.reshape(oh * ow, d)


def roi_align_jax(features_nhwc, boxes_xyxy, box_idx, crop):
    """crop_and_resize style bilinear RoIAlign.  features NHWC (channels-last)."""
    # TODO(synk): data-dependent bilinear gather kept in plain JAX (no clean
    # Pallas tiling at these tiny sizes).
    _, OH, OW, _ = features_nhwc.shape
    frac = jnp.arange(crop, dtype=jnp.float32) / max(crop - 1, 1)

    def one(box, idx):
        fmap = features_nhwc[idx]                            # (OH, OW, C)
        x1, y1, x2, y2 = box[0], box[1], box[2], box[3]
        ys = y1 + (y2 - y1) * frac
        xs = x1 + (x2 - x1) * frac
        y0 = jnp.floor(ys)
        x0 = jnp.floor(xs)
        wy1 = ys - y0
        wx1 = xs - x0
        wy0 = 1.0 - wy1
        wx0 = 1.0 - wx1

        def gather(yi, xi):
            yi = jnp.clip(yi.astype(jnp.int32), 0, OH - 1)
            xi = jnp.clip(xi.astype(jnp.int32), 0, OW - 1)
            return fmap[yi[:, None], xi[None, :], :]         # (crop, crop, C)

        w00 = (wy0[:, None] * wx0[None, :])[:, :, None]
        w01 = (wy0[:, None] * wx1[None, :])[:, :, None]
        w10 = (wy1[:, None] * wx0[None, :])[:, :, None]
        w11 = (wy1[:, None] * wx1[None, :])[:, :, None]
        return (gather(y0, x0) * w00 + gather(y0, x0 + 1) * w01
                + gather(y0 + 1, x0) * w10 + gather(y0 + 1, x0 + 1) * w11)

    return jax.vmap(one)(boxes_xyxy, box_idx)                # (M, crop, crop, C)


def l2_normalize(v, axis):
    return v / jnp.maximum(jnp.linalg.norm(v, axis=axis, keepdims=True), 1e-12)


# ----------------------------------------------------------------------------
# Parameters (kernel-ready: MXU-fed weights pre-cast bf16, Q pre-scaled,
# class/group head stacked + zero-padded to a 128-lane multiple)
# ----------------------------------------------------------------------------
def init_params(key, cfg):
    D = cfg['hidden_dim']
    C = cfg['backbone_channels']
    crop = cfg['crop_size']
    K = cfg['num_group_tokens']
    t = cfg['num_frame']
    nc1 = cfg['num_class'] + 1
    F = cfg['ffn_dim']
    keys = jax.random.split(key, 20)
    bf16 = jnp.bfloat16

    def kaiming(k, fin, fout):
        return jax.random.normal(k, (fin, fout), jnp.float32) * math.sqrt(2.0 / fin)

    sd = 1.0 / math.sqrt(D)
    inv_sqrt_d = 1.0 / math.sqrt(D)
    p = {}
    # backbone 1x1 (K=3) and box-MLP first layer (K=4) stay f32: they feed the VPU.
    p['backbone_w'] = kaiming(keys[0], 3, C)
    p['backbone_b'] = jnp.zeros((C,), jnp.float32)
    p['input_proj_w'] = kaiming(keys[1], C, D).astype(bf16)
    p['input_proj_b'] = jnp.zeros((D,), jnp.float32)
    p['fc_emb_w'] = kaiming(keys[2], crop * crop * C, D).astype(bf16)
    p['fc_emb_b'] = jnp.zeros((D,), jnp.float32)
    p['mlp_w1'] = kaiming(keys[3], 4, D)
    p['mlp_b1'] = jnp.zeros((D,), jnp.float32)
    p['mlp_w2'] = kaiming(keys[4], D, D).astype(bf16)
    p['mlp_b2'] = jnp.zeros((D,), jnp.float32)
    p['mlp_w3'] = kaiming(keys[5], D, D).astype(bf16)
    p['mlp_b3'] = jnp.zeros((D,), jnp.float32)
    # class_emb | group_emb stacked, zero-padded to a 128-lane multiple (lane-dense store)
    n_out = 2 * nc1
    n_pad = ((n_out + 127) // 128) * 128
    head_w = jnp.concatenate([kaiming(keys[6], D, nc1),
                              kaiming(keys[7], D, nc1)], axis=1)
    p['head_cls_w'] = jnp.pad(head_w, ((0, 0), (0, n_pad - n_out))).astype(bf16)
    p['head_cls_b'] = jnp.zeros((n_pad,), jnp.float32)
    p['actor_match_w'] = kaiming(keys[8], D, D).astype(bf16)
    p['actor_match_b'] = jnp.zeros((D,), jnp.float32)
    p['group_match_w'] = kaiming(keys[9], D, D).astype(bf16)
    p['group_match_b'] = jnp.zeros((D,), jnp.float32)
    p['group_query'] = jax.random.normal(keys[10], (K * t, D), jnp.float32)
    # group-transformer weights: pre-stacked QKV/KV, 1/sqrt(D) folded into Q.
    wqkv = jax.random.normal(keys[11], (D, 3 * D), jnp.float32) * sd
    wqkv = wqkv.at[:, :D].multiply(inv_sqrt_d)
    p['gt_wself_qkv'] = wqkv.astype(bf16)
    p['gt_wself_o'] = (jax.random.normal(keys[12], (D, D), jnp.float32) * sd).astype(bf16)
    p['gt_wcross_q'] = (jax.random.normal(keys[13], (D, D), jnp.float32)
                        * sd * inv_sqrt_d).astype(bf16)
    p['gt_wcross_kv'] = (jax.random.normal(keys[14], (D, 2 * D), jnp.float32) * sd).astype(bf16)
    p['gt_wcross_o'] = (jax.random.normal(keys[15], (D, D), jnp.float32) * sd).astype(bf16)
    p['gt_w1'] = (jax.random.normal(keys[16], (D, F), jnp.float32) * sd).astype(bf16)
    p['gt_b1'] = jnp.zeros((F,), jnp.float32)
    p['gt_w2'] = (jax.random.normal(keys[17], (F, D), jnp.float32)
                  * (1.0 / math.sqrt(F))).astype(bf16)
    p['gt_b2'] = jnp.zeros((D,), jnp.float32)
    return p


# ----------------------------------------------------------------------------
# GADTR forward
# ----------------------------------------------------------------------------
def gadtr_forward(params, cfg, x, boxes, dummy_mask):
    bs, t, _, H, W = x.shape
    n = boxes.shape[2]
    D = cfg['hidden_dim']
    C = cfg['backbone_channels']
    K = cfg['num_group_tokens']
    crop = cfg['crop_size']
    nc1 = cfg['num_class'] + 1
    BT = bs * t

    boxes_flat_in = boxes.reshape(-1, 4)                     # (BT*n, 4) normalized cx,cy,w,h

    # ---- backbone (synthetic): stride-4 avg pool + fused [1x1(VPU) -> ReLU -> proj -> K|V] ----
    # TODO(synk): real ResNet-style build_backbone replaced by avgpool + fused Pallas projections.
    stride = 4
    oh, ow = H // stride, W // stride
    S = oh * ow
    xf = x.reshape(BT, 3, oh, stride, ow, stride).mean(axis=(3, 5))   # (BT, 3, oh, ow)
    xcl = xf.transpose(0, 2, 3, 1).reshape(BT * S, 3)
    feat_rows, kv_rows = pallas_backbone_feat_kv(xcl, params)
    features_nhwc = feat_rows.reshape(BT, oh, ow, C)         # channels-last, f32
    kv_mem = kv_rows.reshape(BT, S, 2 * D)                   # bf16 cross-attn K|V

    # sine pos emb projected once through the cross-attn key weight (batch-independent);
    # passed as a (1,S,D) VMEM-resident constant instead of a (BT,S,D) broadcast.
    pos_mem = sine_position_embedding(oh, ow, D)             # (S, D)
    pos_k = jnp.dot(pos_mem, params['gt_wcross_kv'][:, :D].astype(jnp.float32))[None]

    # ---- pairwise distance (batch-parallel VPU kernel) + masks ----
    boxes_center = boxes_flat_in[:, :2].reshape(BT, n, 2)
    boxes_distance = pallas_pairwise_distance(boxes_center)  # (BT, n, n)
    distance_mask = boxes_distance > cfg['distance_threshold']

    dm = jnp.repeat(dummy_mask[:, None, :], t, axis=1).reshape(BT, n)  # bool (BT, n)
    not_dm = (~dm).astype(jnp.float32)
    actor_dummy_mask = not_dm[:, :, None] * not_dm[:, None, :]
    actor_mask = ~(actor_dummy_mask.astype(bool))
    both_dummy = dm[:, :, None] & dm[:, None, :]
    actor_mask = jnp.where(both_dummy, False, actor_mask)
    actor_mask = distance_mask | actor_mask
    group_dummy_mask = dm

    # ---- RoIAlign (JAX glue gather) ----
    cx, cy, bw, bh = (boxes_flat_in[:, 0], boxes_flat_in[:, 1],
                      boxes_flat_in[:, 2], boxes_flat_in[:, 3])
    boxes_xyxy = jnp.stack([(cx - bw / 2) * ow, (cy - bh / 2) * oh,
                            (cx + bw / 2) * ow, (cy + bh / 2) * oh], axis=1)
    box_idx = jnp.repeat(jnp.arange(BT, dtype=jnp.int32), n)
    crops = roi_align_jax(features_nhwc, boxes_xyxy, box_idx, crop)   # (BT*n, crop, crop, C)
    # channel-first flatten to match torch fc_emb input ordering; cast once to bf16
    actor_flat = crops.transpose(0, 3, 1, 2).reshape(BT * n, C * crop * crop)
    actor_flat = actor_flat.astype(jnp.bfloat16)

    # ---- fused actor embedding: fc_emb(+ReLU) + 3-layer box-pos MLP + add ----
    actor_features = pallas_actor_embed(actor_flat, boxes_flat_in, params)
    actor_features = actor_features.reshape(BT, n, D)

    # ---- group transformer (single Pallas attention kernel per (b,t)) ----
    # TODO(synk): multi-layer / multi-head DETR-style group transformer reduced to a
    # single-head self-attn + cross-attn + FFN layer inside one Pallas kernel.
    # TODO(synk): for real configs make hidden_dim a multiple of 128 (256 on v6e/v7x).
    gq = params['group_query'].reshape(t, K, D)
    gq = jnp.broadcast_to(gq[None], (bs, t, K, D)).reshape(BT, K, D)
    tokens = jnp.concatenate([actor_features, gq], axis=1)            # (BT, L, D)
    L = n + K
    neg = jnp.float32(-1e9)
    bias = jnp.zeros((BT, L, L), jnp.float32)
    bias = bias.at[:, :n, :n].set(jnp.where(actor_mask, neg, 0.0))
    bias = bias.at[:, n:, :n].set(jnp.where(group_dummy_mask[:, None, :], neg, 0.0))

    hs = pallas_group_transformer(tokens, bias, kv_mem, pos_k, params)  # (BT, L, D)

    # NOTE: faithful to the torch wrapper formula actor_hs = actor_features + hs[:, :n]
    actor_hs = actor_features.reshape(bs, t, n, D) + hs[:, :n].reshape(bs, t, n, D)
    group_hs = hs[:, n:]                                               # (BT, K, D)

    inst_repr = l2_normalize(actor_hs.mean(axis=1), axis=2)            # (bs, n, D)
    group_repr = l2_normalize(group_hs.reshape(bs, t, K, D).mean(axis=1), axis=2)

    # ---- fused class + group-class heads: one stacked, 128-lane-padded matmul ----
    rows = jnp.concatenate([actor_hs.reshape(BT * n, D),
                            group_hs.reshape(BT * K, D)], axis=0)
    head_out = pallas_linear(rows, params['head_cls_w'], params['head_cls_b'])
    outputs_class = head_out[:BT * n, :nc1]
    outputs_group_class = head_out[BT * n:, nc1:2 * nc1]

    # ---- match embeddings as big M-tiled matmuls, then per-batch bmm + softmax ----
    actor_emb = pallas_linear(inst_repr.reshape(bs * n, D),
                              params['actor_match_w'], params['actor_match_b'],
                              out_dtype=jnp.bfloat16).reshape(bs, n, D)
    group_emb = pallas_linear(group_repr.reshape(bs * K, D),
                              params['group_match_w'], params['group_match_b'],
                              out_dtype=jnp.bfloat16).reshape(bs, K, D)
    membership = pallas_membership(actor_emb, group_emb)               # (bs, K, n)

    return {
        'pred_actions': outputs_class.reshape(bs, t, n, nc1).mean(axis=1),
        'pred_activities': outputs_group_class.reshape(bs, t, K, nc1).mean(axis=1),
        'membership': membership,
        'actor_embeddings': inst_repr,
    }


# ----------------------------------------------------------------------------
if __name__ == "__main__":
    cfg = dict(num_class=8, num_frame=2, num_boxes=4, hidden_dim=32,
               crop_size=2, backbone_channels=8, num_group_tokens=2,
               distance_threshold=0.3, ffn_dim=64, drop_rate=0.1)

    key = jax.random.PRNGKey(0)
    kx, kb, kp = jax.random.split(key, 3)

    bs, t, H, W = 2, cfg['num_frame'], 16, 16
    n = cfg['num_boxes']
    x = jax.random.normal(kx, (bs, t, 3, H, W), jnp.float32)
    centers = jax.random.uniform(kb, (bs, t, n, 2), minval=0.15, maxval=0.85)
    sizes = jnp.full((bs, t, n, 2), 0.25, jnp.float32)
    boxes = jnp.concatenate([centers, sizes], axis=-1)       # normalized cx,cy,w,h
    dummy_mask = jnp.array([[False, False, False, False],
                            [False, False, False, True]])

    params = init_params(kp, cfg)
    out = gadtr_forward(params, cfg, x, boxes, dummy_mask)
    out = jax.block_until_ready(out)

    assert out['pred_actions'].shape == (bs, cfg['num_boxes'], cfg['num_class'] + 1)
    assert out['pred_activities'].shape == (bs, cfg['num_group_tokens'], cfg['num_class'] + 1)
    assert out['membership'].shape == (bs, cfg['num_group_tokens'], cfg['num_boxes'])
    assert out['actor_embeddings'].shape == (bs, cfg['num_boxes'], cfg['hidden_dim'])
    for v in out.values():
        assert bool(jnp.all(jnp.isfinite(v)))

    print("KERNEL_OK")
</pallas_src>

<mosaic_0001>
module attributes {stable_mosaic.version = 11 : i64} {
  func.func @_backbone_feat_kv_kernel(%arg0: i32, %arg1: memref<64x3xf32, #tpu.memory_space<vmem>>, %arg2: memref<3x8xf32, #tpu.memory_space<vmem>>, %arg3: memref<1x8xf32, #tpu.memory_space<vmem>>, %arg4: memref<8x32xbf16, #tpu.memory_space<vmem>>, %arg5: memref<1x32xf32, #tpu.memory_space<vmem>>, %arg6: memref<32x64xbf16, #tpu.memory_space<vmem>>, %arg7: memref<64x8xf32, #tpu.memory_space<vmem>>, %arg8: memref<64x64xbf16, #tpu.memory_space<vmem>>) attributes {dimension_semantics = [#tpu.dimension_semantics<parallel>], iteration_bounds = array<i64: 1>, scalar_prefetch = 0 : i64, scratch_operands = 0 : i64, tpu.core_type = #tpu.core_type<tc>, window_params = [{transform_indices = @transform_0, window_bounds = array<i64: 64, 3>}, {pipeline_mode = #tpu.pipeline_mode<synchronous>, transform_indices = @transform_1, window_bounds = array<i64: 3, 8>}, {pipeline_mode = #tpu.pipeline_mode<synchronous>, transform_indices = @transform_2, window_bounds = array<i64: 1, 8>}, {pipeline_mode = #tpu.pipeline_mode<synchronous>, transform_indices = @transform_3, window_bounds = array<i64: 8, 32>}, {pipeline_mode = #tpu.pipeline_mode<synchronous>, transform_indices = @transform_4, window_bounds = array<i64: 1, 32>}, {pipeline_mode = #tpu.pipeline_mode<synchronous>, transform_indices = @transform_5, window_bounds = array<i64: 32, 64>}, {transform_indices = @transform_6, window_bounds = array<i64: 64, 8>}, {transform_indices = @transform_7, window_bounds = array<i64: 64, 64>}]} {
    %c0 = arith.constant 0 : index
    %c0_0 = arith.constant 0 : index
    %0 = vector.load %arg1[%c0, %c0_0] : memref<64x3xf32, #tpu.memory_space<vmem>>, vector<64x3xf32>
    %1 = vector.extract_strided_slice %0 {offsets = [0, 0], sizes = [64, 1], strides = [1, 1]} : vector<64x3xf32> to vector<64x1xf32>
    %c0_1 = arith.constant 0 : index
    %c0_2 = arith.constant 0 : index
    %2 = vector.load %arg2[%c0_1, %c0_2] : memref<3x8xf32, #tpu.memory_space<vmem>>, vector<1x8xf32>
    %3 = vector.broadcast %1 : vector<64x1xf32> to vector<64x8xf32>
    %4 = vector.broadcast %2 : vector<1x8xf32> to vector<64x8xf32>
    %5 = arith.mulf %3, %4 : vector<64x8xf32>
    %6 = vector.extract_strided_slice %0 {offsets = [0, 1], sizes = [64, 1], strides = [1, 1]} : vector<64x3xf32> to vector<64x1xf32>
    %c1 = arith.constant 1 : index
    %c0_3 = arith.constant 0 : index
    %7 = vector.load %arg2[%c1, %c0_3] : memref<3x8xf32, #tpu.memory_space<vmem>>, vector<1x8xf32>
    %8 = vector.broadcast %6 : vector<64x1xf32> to vector<64x8xf32>
    %9 = vector.broadcast %7 : vector<1x8xf32> to vector<64x8xf32>
    %10 = arith.mulf %8, %9 : vector<64x8xf32>
    %11 = arith.addf %5, %10 : vector<64x8xf32>
    %12 = vector.extract_strided_slice %0 {offsets = [0, 2], sizes = [64, 1], strides = [1, 1]} : vector<64x3xf32> to vector<64x1xf32>
    %c2 = arith.constant 2 : index
    %c0_4 = arith.constant 0 : index
    %13 = vector.load %arg2[%c2, %c0_4] : memref<3x8xf32, #tpu.memory_space<vmem>>, vector<1x8xf32>
    %14 = vector.broadcast %12 : vector<64x1xf32> to vector<64x8xf32>
    %15 = vector.broadcast %13 : vector<1x8xf32> to vector<64x8xf32>
    %16 = arith.mulf %14, %15 : vector<64x8xf32>
    %17 = arith.addf %11, %16 : vector<64x8xf32>
    %c0_5 = arith.constant 0 : index
    %c0_6 = arith.constant 0 : index
    %18 = vector.load %arg3[%c0_5, %c0_6] : memref<1x8xf32, #tpu.memory_space<vmem>>, vector<1x8xf32>
    %19 = vector.broadcast %18 : vector<1x8xf32> to vector<64x8xf32>
    %20 = arith.addf %17, %19 : vector<64x8xf32>
    %cst = arith.constant 0.000000e+00 : f32
    %21 = vector.broadcast %cst : f32 to vector<64x8xf32>
    %22 = arith.maximumf %20, %21 : vector<64x8xf32>
    %c0_7 = arith.constant 0 : index
    %c0_8 = arith.constant 0 : index
    %23 = vector.load %arg7[%c0_7, %c0_8] : memref<64x8xf32, #tpu.memory_space<vmem>>, vector<64x8xf32>
    tpu.vector_store %arg7[%c0_7, %c0_8], %22 {strides = array<i32>} : memref<64x8xf32, #tpu.memory_space<vmem>>, vector<64x8xf32>,
    %c0_9 = arith.constant 0 : index
    %c0_10 = arith.constant 0 : index
    %24 = vector.load %arg4[%c0_9, %c0_10] : memref<8x32xbf16, #tpu.memory_space<vmem>>, vector<8x32xbf16>
    %25 = arith.truncf %22 : vector<64x8xf32> to vector<64x8xbf16>
    %cst_11 = arith.constant dense<0.000000e+00> : vector<64x32xf32>
    %26 = tpu.matmul %25, %24, %cst_11 {dimension_numbers = #tpu.dot_dimension_numbers<[1], [0], [0], [1], [0, 0, 1, 1], [], []>} : vector<64x8xbf16>, vector<8x32xbf16>, vector<64x32xf32> -> vector<64x32xf32>
    %c0_12 = arith.constant 0 : index
    %c0_13 = arith.constant 0 : index
    %27 = vector.load %arg5[%c0_12, %c0_13] : memref<1x32xf32, #tpu.memory_space<vmem>>, vector<1x32xf32>
    %28 = vector.broadcast %27 : vector<1x32xf32> to vector<64x32xf32>
    %29 = arith.addf %26, %28 : vector<64x32xf32>
    %c0_14 = arith.constant 0 : index
    %c0_15 = arith.constant 0 : index
    %30 = vector.load %arg6[%c0_14, %c0_15] : memref<32x64xbf16, #tpu.memory_space<vmem>>, vector<32x64xbf16>
    %31 = arith.truncf %29 : vector<64x32xf32> to vector<64x32xbf16>
    %cst_16 = arith.constant dense<0.000000e+00> : vector<64x64xf32>
    %32 = tpu.matmul %31, %30, %cst_16 {dimension_numbers = #tpu.dot_dimension_numbers<[1], [0], [0], [1], [0, 0, 1, 1], [], []>} : vector<64x32xbf16>, vector<32x64xbf16>, vector<64x64xf32> -> vector<64x64xf32>
    %33 = arith.truncf %32 : vector<64x64xf32> to vector<64x64xbf16>
    %c0_17 = arith.constant 0 : index
    %c0_18 = arith.constant 0 : index
    %34 = vector.load %arg8[%c0_17, %c0_18] : memref<64x64xbf16, #tpu.memory_space<vmem>>, vector<64x64xbf16>
    tpu.vector_store %arg8[%c0_17, %c0_18], %33 {strides = array<i32>} : memref<64x64xbf16, #tpu.memory_space<vmem>>, vector<64x64xbf16>,
    return
  }
  func.func @transform_0(%arg0: i32) -> (i32, i32) {
    %c0_i32 = arith.constant 0 : i32
    %c0_i32_0 = arith.constant 0 : i32
    return %arg0, %c0_i32 : i32, i32
  }
  func.func @transform_1(%arg0: i32) -> (i32, i32) {
    %c0_i32 = arith.constant 0 : i32
    %c0_i32_0 = arith.constant 0 : i32
    %c0_i32_1 = arith.constant 0 : i32
    return %c0_i32, %c0_i32_0 : i32, i32
  }
  func.func @transform_2(%arg0: i32) -> (i32, i32) {
    %c0_i32 = arith.constant 0 : i32
    %c0_i32_0 = arith.constant 0 : i32
    %c0_i32_1 = arith.constant 0 : i32
    return %c0_i32, %c0_i32_0 : i32, i32
  }
  func.func @transform_3(%arg0: i32) -> (i32, i32) {
    %c0_i32 = arith.constant 0 : i32
    %c0_i32_0 = arith.constant 0 : i32
    %c0_i32_1 = arith.constant 0 : i32
    return %c0_i32, %c0_i32_0 : i32, i32
  }
  func.func @transform_4(%arg0: i32) -> (i32, i32) {
    %c0_i32 = arith.constant 0 : i32
    %c0_i32_0 = arith.constant 0 : i32
    %c0_i32_1 = arith.constant 0 : i32
    return %c0_i32, %c0_i32_0 : i32, i32
  }
  func.func @transform_5(%arg0: i32) -> (i32, i32) {
    %c0_i32 = arith.constant 0 : i32
    %c0_i32_0 = arith.constant 0 : i32
    %c0_i32_1 = arith.constant 0 : i32
    return %c0_i32, %c0_i32_0 : i32, i32
  }
  func.func @transform_6(%arg0: i32) -> (i32, i32) {
    %c0_i32 = arith.constant 0 : i32
    %c0_i32_0 = arith.constant 0 : i32
    return %arg0, %c0_i32 : i32, i32
  }
  func.func @transform_7(%arg0: i32) -> (i32, i32) {
    %c0_i32 = arith.constant 0 : i32
    %c0_i32_0 = arith.constant 0 : i32
    return %arg0, %c0_i32 : i32, i32
  }
}

</mosaic_0001>

<bundles_post_ra>
// kernel: tpu_custom_call.1
= control target key start
LH: loop header
LB: loop body
LE: loop exit
PB: predicated region body
PF: predicated region fallthrough
CT: control target
= control target key end

     0   :  { %v586_v2 = vmov 2   ;;  %v587_v3 = vmov 1   ;;  %s771_s0 = inlined_call_operand.vmem [shape: f32[64,3], index: 0, kind: input, shape index: {}]   ;;  %s772_s1 = inlined_call_operand.vmem [shape: f32[3,8], index: 1, kind: input, shape index: {}]   ;;  %s773_s2 = inlined_call_operand.vmem [shape: f32[1,8], index: 2, kind: input, shape index: {}]   ;;  %s774_s3 = inlined_call_operand.vmem [shape: bf16[8,32], index: 3, kind: input, shape index: {}]   ;;  %s775_s4 = inlined_call_operand.vmem [shape: f32[1,32], index: 4, kind: input, shape index: {}]   ;;  %s776_s5 = inlined_call_operand.vmem [shape: bf16[32,64], index: 5, kind: input, shape index: {}]   ;;  %s777_s6 = inlined_call_operand.vmem [shape: f32[64,8], index: 6, kind: output, shape index: {0}]   ;;  %s778_s7 = inlined_call_operand.hbm [shape: bf16[64,64], index: 7, kind: output, shape index: {1}]  }
   0x1   :  { %v28_v0 = vld [vmem:[%s771_s0 + $0x8] sm:$0xff]  ;;  %v27_v1 = vld [vmem:[%s771_s0] sm:$0xff]  ;;  %553 = vset.pattern.permute.xlu0 %v586_v2  ;;  %549 = vset.pattern.permute.xlu1 %v587_v3 }
   0x2   :  { %147 = vperm.xlu0 %553, %v28_v0   ;;  %90 = vperm.xlu1 %549, %v27_v1  }
   0x3   :  { %13 = vsyncpa [#allocation3], 0  ;;  %v588_v4 = vmov 0   ;;  %v30_v5 = vld [vmem:[%s771_s0 + $0x18] sm:$0xff]  ;;  %v29_v6 = vld [vmem:[%s771_s0 + $0x10] sm:$0xff]  ;;  %vm250_vm0 = vcmask 1043456  }
   0x4   :  { %v31_v7 = vld [vmem:[%s771_s0 + $0x20] sm:$0xff]  ;;  %v32_v8 = vld [vmem:[%s771_s0 + $0x28] sm:$0xff]  ;;  %v33_v9 = vld [vmem:[%s771_s0 + $0x30] sm:$0xff]  ;;  %vm217_vm1 = vcmask 64512   ;;  %vm339_vm2 = vcmask 261120   ;;  %vm449_vm3 = vcmask 519168  }
   0x5   :  { %v226_v10 = vld [vmem:[%s774_s3] sm:$0xf]  ;;  %v34_v12 = vld [vmem:[%s771_s0 + $0x38] sm:$0xff] }
   0x6   :  { %554 = vset.pattern.permute.xlu0 %v588_v4  ;;  %94 = vperm.xlu1 %549, %v28_v0   ;;  %v252_v11 = vsel %vm250_vm0, %v226_v10, 0  ;;  %v662_v17 = vld [vmem:[%s772_s1 + $0x2] ss:$0 sm:$0xff]  ;;  %v667_v18 = vld [vmem:[%s772_s1 + $0x1] ss:$0 sm:$0xff] }
   0x7   :  { %38 = vperm.xlu0 %554, %v27_v1   ;;  %542 = vmatprep.subr.msk.bf16.mxu0 %vm250_vm0, %v226_v10  ;;  %v672_v19 = vld [vmem:[%s772_s1] ss:$0 sm:$0xff] }
   0x8   :  { %521 = vmatpush3.bf16.msra.mxu0 %v252_v11  ;;  %v680_v27 = vld [vmem:[%s773_s2] ss:$0 sm:$0xff] }
   0xa   :  { %550 = vset.pattern.permute.xlu1 %v588_v4 }
   0xb   :  { %43 = vperm.xlu0 %554, %v28_v0   ;;  %53 = vperm.xlu1 %550, %v30_v5  }
   0xf   :  { %48 = vperm.xlu0 %554, %v29_v6   ;;  %551 = vset.pattern.permute.xlu1 %v587_v3 }
  0x10   :  { %102 = vperm.xlu1 %551, %v30_v5  }
  0x13   :  { %58 = vperm.xlu0 %554, %v31_v7  }
  0x14   :  { %552 = vset.pattern.permute.xlu1 %v586_v2 }
  0x15   :  { %143 = vperm.xlu1 %552, %v27_v1  }
  0x17   :  { %555 = vset.pattern.permute.xlu0 %v587_v3 }
  0x18   :  { %98 = vperm.xlu0 %555, %v29_v6  }
  0x19   :  { %151 = vperm.xlu1 %552, %v29_v6  }
  0x1c   :  { %110 = vperm.xlu0 %555, %v32_v8  }
  0x1d   :  { %155 = vperm.xlu1 %552, %v30_v5  }
  0x20   :  { %114 = vperm.xlu0 %555, %v33_v9  }
  0x21   :  { %556 = vset.pattern.permute.xlu1 %v588_v4 }
  0x22   :  { %63 = vperm.xlu1 %556, %v32_v8  }
  0x24   :  { %560 = vset.pattern.permute.xlu0 %v586_v2 }
  0x25   :  { %159 = vperm.xlu0 %560, %v31_v7  }
  0x26   :  { %557 = vset.pattern.permute.xlu1 %v587_v3 }
  0x27   :  { %106 = vperm.xlu1 %557, %v31_v7  }
  0x29   :  { %171 = vperm.xlu0 %560, %v34_v12  }
  0x2b   :  { %558 = vset.pattern.permute.xlu1 %v588_v4 }
  0x2c   :  { %68 = vperm.xlu1 %558, %v33_v9  }
  0x30   :  { %73 = vperm.xlu1 %558, %v34_v12  }
  0x34   :  { %559 = vset.pattern.permute.xlu1 %v587_v3 }
  0x35   :  { %118 = vperm.xlu1 %559, %v34_v12  }
  0x39   :  { %561 = vset.pattern.permute.xlu1 %v586_v2 }
  0x3a   :  { %163 = vperm.xlu1 %561, %v32_v8  }
  0x3e   :  { %167 = vperm.xlu1 %561, %v33_v9  }
  0x7d   :  { %v91_v13 = vpop.permute.xlu1 %90  ;;  %v148_v14 = vpop.permute.xlu0 %147 }
  0x7e   :  { %v179_v22 = vmul.f32 %v662_v17, %v148_v14  ;;  %v125_v33 = vmul.f32 %v667_v18, %v91_v13 }
  0x81   :  { %v95_v15 = vpop.permute.xlu1 %94 }
  0x82   :  { %v39_v16 = vpop.permute.xlu0 %38  ;;  %v126_v23 = vmul.f32 %v667_v18, %v95_v15 }
  0x83   :  { %v80_v30 = vmul.f32 %v672_v19, %v39_v16 }
  0x85   :  { %v133_v36 = vadd.f32 %v125_v33, %v80_v30 }
  0x86   :  { %v44_v20 = vpop.permute.xlu0 %43  ;;  %v54_v21 = vpop.permute.xlu1 %53 }
  0x87   :  { %v81_v24 = vmul.f32 %v672_v19, %v44_v20  ;;  %v83_v47 = vmul.f32 %v672_v19, %v54_v21 }
  0x89   :  { %v134_v25 = vadd.f32 %v126_v23, %v81_v24 }
  0x8a   :  { %v49_v26 = vpop.permute.xlu0 %48 }
  0x8b   :  { %v187_v28 = vadd.f32 %v179_v22, %v134_v25  ;;  %v103_v29 = vpop.permute.xlu1 %102  ;;  %v82_v38 = vmul.f32 %v672_v19, %v49_v26 }
  0x8c   :  { %v128_v43 = vmul.f32 %v667_v18, %v103_v29 }
  0x8d   :  { %v202_v31 = vadd.f32 %v680_v27, %v187_v28 }
  0x8e   :  { %v59_v32 = vpop.permute.xlu0 %58  ;;  %v136_v52 = vadd.f32 %v128_v43, %v83_v47 }
  0x8f   :  { %v210_v34 = vmax.f32 %v202_v31, 0.0  ;;  %v84_v1 = vmul.f32 %v672_v19, %v59_v32 }
  0x90   :  { %v144_v35 = vpop.permute.xlu1 %143 }
  0x91   :  { %v178_v37 = vmul.f32 %v662_v17, %v144_v35  ;;  %219 = vst.msk [vmem:[%s777_s6 + $0x8] sm:$0xff] %vm217_vm1, %v210_v34 }
  0x93   :  { %v186_v39 = vadd.f32 %v178_v37, %v133_v36  ;;  %v99_v40 = vpop.permute.xlu0 %98 }
  0x94   :  { %v127_v41 = vmul.f32 %v667_v18, %v99_v40  ;;  %v152_v42 = vpop.permute.xlu1 %151 }
  0x95   :  { %v180_v44 = vmul.f32 %v662_v17, %v152_v42  ;;  %v201_v45 = vadd.f32 %v680_v27, %v186_v39  ;;  %v482_v42 = vld [vmem:[%s775_s4] ss:$0 sm:$0xff]  ;;  %s589_s4 = smov [#allocation2]  }
  0x96   :  { %v135_v46 = vadd.f32 %v127_v41, %v82_v38  ;;  %v562_v38 = vld [vmem:[%s776_s5 + $0x8] sm:$0xff]  }
  0x97   :  { %v209_v48 = vmax.f32 %v201_v45, 0.0  ;;  %v111_v49 = vpop.permute.xlu0 %110  ;;  %530 = vmatprep.subr.bf16.mxu1 %v562_v38 }
  0x98   :  { %v188_v50 = vadd.f32 %v180_v44, %v135_v46  ;;  %v156_v51 = vpop.permute.xlu1 %155  ;;  %v130_v15 = vmul.f32 %v667_v18, %v111_v49  ;;  %531 = vmatpush3.bf16.msra.mxu1 %v562_v38 }
  0x99   :  { %v181_v53 = vmul.f32 %v662_v17, %v156_v51  ;;  %218 = vst.msk [vmem:[%s777_s6] sm:$0xff] %vm217_vm1, %v209_v48  ;;  %v227_v54 = vpack.c.bf16 %v210_v34, %v209_v48 }
  0x9a   :  { %v203_v55 = vadd.f32 %v680_v27, %v188_v50 }
  0x9b   :  { %v189_v56 = vadd.f32 %v181_v53, %v136_v52  ;;  %522 = vmatprep.mubr.msk.bf16.mxu0 %vm217_vm1, %v227_v54  ;;  %v115_v57 = vpop.permute.xlu0 %114 }
  0x9c   :  { %v211_v58 = vmax.f32 %v203_v55, 0.0  ;;  %v131_v24 = vmul.f32 %v667_v18, %v115_v57 }
  0x9d   :  { %v204_v59 = vadd.f32 %v680_v27, %v189_v56  ;;  %v64_v60 = vpop.permute.xlu1 %63 }
  0x9e   :  { %220 = vst.msk [vmem:[%s777_s6 + $0x10] sm:$0xff] %vm217_vm1, %v211_v58  ;;  %v85_v16 = vmul.f32 %v672_v19, %v64_v60 }
  0x9f   :  { %v212_v61 = vmax.f32 %v204_v59, 0.0 }
  0xa0   :  { %v160_v62 = vpop.permute.xlu0 %159  ;;  %v138_v23 = vadd.f32 %v130_v15, %v85_v16 }
  0xa1   :  { %221 = vst.msk [vmem:[%s777_s6 + $0x18] sm:$0xff] %vm217_vm1, %v212_v61  ;;  %v228_v63 = vpack.c.bf16 %v212_v61, %v211_v58  ;;  %v182_v3 = vmul.f32 %v662_v17, %v160_v62 }
  0xa2   :  { %v107_v0 = vpop.permute.xlu1 %106 }
  0xa3   :  { %v129_v2 = vmul.f32 %v667_v18, %v107_v0  ;;  %523 = vmatmul.mubr.msk.bf16.vlgmr.msra.gmra.mxu0 %vm217_vm1, %v228_v63 }
  0xa4   :  { %v172_v10 = vpop.permute.xlu0 %171 }
  0xa5   :  { %v137_v4 = vadd.f32 %v129_v2, %v84_v1  ;;  %v185_v14 = vmul.f32 %v662_v17, %v172_v10 }
  0xa7   :  { %v190_v5 = vadd.f32 %v182_v3, %v137_v4  ;;  %v69_v6 = vpop.permute.xlu1 %68 }
  0xa8   :  { %v86_v25 = vmul.f32 %v672_v19, %v69_v6 }
  0xa9   :  { %v205_v7 = vadd.f32 %v680_v27, %v190_v5 }
  0xaa   :  { %v139_v32 = vadd.f32 %v131_v24, %v86_v25 }
  0xab   :  { %v213_v8 = vmax.f32 %v205_v7, 0.0  ;;  %v74_v9 = vpop.permute.xlu1 %73 }
  0xac   :  { %v87_v12 = vmul.f32 %v672_v19, %v74_v9 }
  0xad   :  { %222 = vst.msk [vmem:[%s777_s6 + $0x20] sm:$0xff] %vm217_vm1, %v213_v8 }
  0xb0   :  { %v119_v11 = vpop.permute.xlu1 %118 }
  0xb1   :  { %v132_v13 = vmul.f32 %v667_v18, %v119_v11 }
  0xb3   :  { %v140_v20 = vadd.f32 %v132_v13, %v87_v12 }
  0xb5   :  { %v193_v21 = vadd.f32 %v185_v14, %v140_v20  ;;  %v164_v22 = vpop.permute.xlu1 %163 }
  0xb6   :  { %v183_v26 = vmul.f32 %v662_v17, %v164_v22 }
  0xb7   :  { %v208_v28 = vadd.f32 %v680_v27, %v193_v21 }
  0xb8   :  { %v191_v29 = vadd.f32 %v183_v26, %v138_v23 }
  0xb9   :  { %v216_v30 = vmax.f32 %v208_v28, 0.0  ;;  %v168_v31 = vpop.permute.xlu1 %167 }
  0xba   :  { %v206_v33 = vadd.f32 %v680_v27, %v191_v29  ;;  %v184_v34 = vmul.f32 %v662_v17, %v168_v31 }
  0xbb   :  { %225 = vst.msk [vmem:[%s777_s6 + $0x38] sm:$0xff] %vm217_vm1, %v216_v30 }
  0xbc   :  { %v214_v18 = vmax.f32 %v206_v33, 0.0  ;;  %v192_v35 = vadd.f32 %v184_v34, %v139_v32 }
  0xbe   :  { %223 = vst.msk [vmem:[%s777_s6 + $0x28] sm:$0xff] %vm217_vm1, %v214_v18  ;;  %v229_v19 = vpack.c.bf16 %v214_v18, %v213_v8  ;;  %v207_v36 = vadd.f32 %v680_v27, %v192_v35  ;;  %v563_v27 = vld [vmem:[%s776_s5] sm:$0xff]   ;;  %s465_s5 = sshll.u32 %s589_s4, 4  ;;  %s466_s5 = int_to_ptr.vmem [resolvable:$true] %s465_s5 }
  0xbf   :  { %532 = vmatprep.subr.bf16.mxu1 %v563_v27  ;;  %s564_s20 = scalar_lea.vmem %s466_s5, 512  ;;  %p569_p1 = scmp.lt.s32.totalorder %s466_s5, %s466_s5 }
  0xc0   :  { %v215_v37 = vmax.f32 %v207_v36, 0.0  ;;  %526 = vmatprep.mubr.msk.bf16.mxu0 %vm217_vm1, %v229_v19  ;;  %533 = vmatpush3.bf16.msra.mxu1 %v563_v27  ;;  %p565_p0 = scmp.ne.s32.totalorder %s466_s5, %s564_s20  ;;  %p570_p2 = scmp.lt.s32.totalorder %s564_s20, %s564_s20 }
  0xc2   :  { %224 = vst.msk [vmem:[%s777_s6 + $0x30] sm:$0xff] %vm217_vm1, %v215_v37  ;;  %v230_v17 = vpack.c.bf16 %v216_v30, %v215_v37  ;;  %p571_p3 = por %p570_p2, %p569_p1 }
  0xc4   :  { %527 = vmatmul.mubr.msk.bf16.gmra.mxu0 %vm217_vm1, %v230_v17  ;;  %p572_p4 = pnand %p571_p3, %p565_p0 }
 0x163   :  { %v524_v39 = vpop.f32.mrf.mxu0 }
 0x164   :  { %v297_v47 = vadd.f32 %v524_v39, %v482_v42 }
 0x165   :  { %v288_v40 = vpop.f32.mrf.mxu0 }
 0x166   :  { %v289_v45 = vadd.f32 %v482_v42, %v288_v40 }
 0x167   :  { %v525_v41 = vpop.f32.mrf.mxu0 }
 0x168   :  { %v300_v43 = vadd.f32 %v525_v41, %v482_v42 }
 0x169   :  { %v291_v44 = vpop.f32.mrf.mxu0 }
 0x16a   :  { %v292_v46 = vadd.f32 %v482_v42, %v291_v44  ;;  %v324_v49 = vpack.c.bf16 %v300_v43, %v297_v47 }
 0x16c   :  { %v323_v48 = vpack.c.bf16 %v292_v46, %v289_v45 }
 0x16e   :  { %534 = vmatprep.mubr.msk.bf16.mxu1 %vm339_vm2, %v323_v48 }
 0x16f   :  { %535 = vmatmul.mubr.msk.bf16.vlgmr.msra.gmra.mxu1 %vm339_vm2, %v324_v49 }
 0x184   :  { %v528_v50 = vpop.f32.mrf.mxu0 }
 0x185   :  { %v313_v57 = vadd.f32 %v528_v50, %v482_v42 }
 0x186   :  { %v304_v51 = vpop.f32.mrf.mxu0 }
 0x187   :  { %v305_v55 = vadd.f32 %v482_v42, %v304_v51 }
 0x188   :  { %v529_v52 = vpop.f32.mrf.mxu0 }
 0x189   :  { %v316_v53 = vadd.f32 %v529_v52, %v482_v42 }
 0x18a   :  { %v307_v54 = vpop.f32.mrf.mxu0 }
 0x18b   :  { %v308_v56 = vadd.f32 %v482_v42, %v307_v54  ;;  %v326_v59 = vpack.c.bf16 %v316_v53, %v313_v57 }
 0x18d   :  { %v325_v58 = vpack.c.bf16 %v308_v56, %v305_v55 }
 0x18f   :  { %538 = vmatprep.mubr.msk.bf16.mxu1 %vm339_vm2, %v325_v58 }
 0x190   :  { %539 = vmatmul.mubr.msk.bf16.gmra.mxu1 %vm339_vm2, %v326_v59 }
 0x22f   :  { %v536_v60 = vpop.f32.mrf.mxu1 }
 0x230   :  { %v503_v61 = vpack.c.bf16 %v536_v60, %v536_v60 }
 0x231   :  { %v386_v62 = vpop.f32.mrf.mxu1 }
 0x232   :  { %452 = vst.msk [vmem:[#allocation2 + $0x8] sm:$0xf] %vm449_vm3, %v503_v61  ;;  %v501_v63 = vpack.c.bf16 %v386_v62, %v386_v62 }
 0x233   :  { %v537_v0 = vpop.f32.mrf.mxu1 }
 0x234   :  { %450 = vst.msk [vmem:[#allocation2] sm:$0xf] %vm449_vm3, %v501_v63  ;;  %v504_v1 = vpack.c.bf16 %v537_v0, %v537_v0 }
 0x235   :  { %v389_v2 = vpop.f32.mrf.mxu1 }
 0x236   :  { %453 = vst.msk [vmem:[#allocation2 + $0xc] sm:$0xf] %vm449_vm3, %v504_v1  ;;  %v502_v3 = vpack.c.bf16 %v389_v2, %v389_v2 }
 0x238   :  { %451 = vst.msk [vmem:[#allocation2 + $0x4] sm:$0xf] %vm449_vm3, %v502_v3 }
 0x250   :  { %v540_v4 = vpop.f32.mrf.mxu1 }
 0x251   :  { %v507_v5 = vpack.c.bf16 %v540_v4, %v540_v4 }
 0x252   :  { %v402_v6 = vpop.f32.mrf.mxu1 }
 0x253   :  { %456 = vst.msk [vmem:[#allocation2 + $0x18] sm:$0xf] %vm449_vm3, %v507_v5  ;;  %v505_v7 = vpack.c.bf16 %v402_v6, %v402_v6 }
 0x254   :  { %v541_v8 = vpop.f32.mrf.mxu1 }
 0x255   :  { %454 = vst.msk [vmem:[#allocation2 + $0x10] sm:$0xf] %vm449_vm3, %v505_v7  ;;  %v508_v9 = vpack.c.bf16 %v541_v8, %v541_v8 }
 0x256   :  { %v405_v10 = vpop.f32.mrf.mxu1 }
 0x257   :  { %457 = vst.msk [vmem:[#allocation2 + $0x1c] sm:$0xf] %vm449_vm3, %v508_v9  ;;  %v506_v11 = vpack.c.bf16 %v405_v10, %v405_v10 }
 0x259   :  { %455 = vst.msk [vmem:[#allocation2 + $0x14] sm:$0xf] %vm449_vm3, %v506_v11 }
 0x25a   :  { %575 = shalt.err (!%p572_p4)
}
 0x25b   :  { %s590_s0 = smov 64   ;;  %s591_s21 = smov 4  }
 0x25c   :  { %471 = dma.vmem_to_hbm [thread:$0]  %s466_s5, 512, %s778_s7, [#allocation3], %s590_s0, %s590_s0, %s591_s21  }
 0x25d   :  { %584 = dma.done.wait [#allocation3], 512  }
 0x25e   :  { %585 = vsyncadd [#allocation3], 4294966784 }
 0x25f   :  { %477 = vsyncpa [#allocation3], 1 }

</bundles_post_ra>
